<compile_context>
chip_gen: v7x
topology: tpu7x:2x2x1
jax: 0.10.0
libtpu: 0.0.40
codegen_flags: <defaults>
</compile_context>

<pallas_src>
import functools

import jax
import jax.numpy as jnp
from jax.experimental import pallas as pl
from jax.experimental.pallas import tpu as pltpu


def _lowest(dtype):
    dtype = jnp.dtype(dtype)
    if jnp.issubdtype(dtype, jnp.floating):
        return jnp.array(-jnp.inf, dtype)
    return jnp.array(jnp.iinfo(dtype).min, dtype)


def _concat_pool_kernel(x_ref, o_ref, *scratch, inv_hw, hw_total, hw_t, c_t,
                        n_c_tiles, n_hw_tiles, mask_tail):
    """One grid step.

    x_ref   : (b_t, c_t, hw_t) input block in the native dtype.
    o_ref   : (b_t, 2, C) lane-dense output block, resident across the c / hw grid axes.
    scratch : () when the HW axis is not split, else two (b_t, c_t, 1) f32 accumulators
              (running max, running sum) persistent across the HW grid axis.
    """
    k = pl.program_id(2)
    x = x_ref[...]

    if mask_tail:
        # The last HW tile may read past HW (padded, unspecified values): mask them out.
        pos = k * hw_t + jax.lax.broadcasted_iota(jnp.int32, x.shape, 2)
        valid = pos < hw_total
        x_max = jnp.where(valid, x, _lowest(x.dtype))
        x_sum = jnp.where(valid, x, jnp.zeros((), x.dtype))
    else:
        x_max = x
        x_sum = x

    # keepdims=True keeps the reduced channel vector on sublanes; the sublane->lane
    # relayout happens exactly once, inside the finalize store below.
    blk_max = jnp.max(x_max, axis=-1, keepdims=True).astype(jnp.float32)
    blk_sum = jnp.sum(x_sum, axis=-1, keepdims=True, dtype=jnp.float32)

    def _store(mx, sm):
        mx2 = mx[..., 0].astype(o_ref.dtype)                 # (b_t, c_t): one relayout
        av2 = (sm[..., 0] * inv_hw).astype(o_ref.dtype)
        if n_c_tiles == 1:
            o_ref[:, 0, :] = mx2
            o_ref[:, 1, :] = av2
        else:
            start = pl.multiple_of(pl.program_id(1) * c_t, c_t)
            o_ref[:, 0, pl.ds(start, c_t)] = mx2
            o_ref[:, 1, pl.ds(start, c_t)] = av2

    if n_hw_tiles == 1:
        # Single spatial tile: no accumulation / scratch round-trip needed.
        _store(blk_max, blk_sum)
    else:
        max_sc, sum_sc = scratch

        @pl.when(k == 0)
        def _():
            max_sc[...] = blk_max
            sum_sc[...] = blk_sum

        @pl.when(k > 0)
        def _():
            max_sc[...] = jnp.maximum(max_sc[...], blk_max)
            sum_sc[...] = sum_sc[...] + blk_sum

        @pl.when(k == n_hw_tiles - 1)
        def _():
            _store(max_sc[...], sum_sc[...])


def _sublane_unit(dtype):
    # Packing-aware sublane tile: 8 for 4-byte, 16 for 2-byte, 32 for 1-byte dtypes.
    return max(8, 32 // jnp.dtype(dtype).itemsize)


def _largest_divisor_tile(extent, unit, cap):
    """Largest t <= cap with t % unit == 0 and extent % t == 0, else None."""
    cap = min(cap, extent)
    t = (cap // unit) * unit
    while t >= unit:
        if extent % t == 0:
            return t
        t -= unit
    return None


def _largest_batch_tile(extent, cap):
    """Largest divisor of extent that is <= cap (always >= 1)."""
    t = max(1, min(extent, cap))
    while t > 1 and extent % t != 0:
        t -= 1
    return t


def _pick_hw_tile(hw, hw_cap):
    """128-multiple spatial tile <= hw_cap; prefer exact divisors, else mask the tail."""
    hw_t = _largest_divisor_tile(hw, 128, hw_cap)
    if hw_t is not None:
        return hw_t, False
    hw_t = min(hw_cap, max(128, (hw // 128) * 128))
    n = pl.cdiv(hw, hw_t)
    return hw_t, (n * hw_t != hw)


def _vmem_budget(max_block_bytes, vmem_limit_bytes):
    """Generation-gated sizing: v5e/v6e have 128 MiB physical VMEM, v7x only 64 MiB."""
    try:
        cap = int(pltpu.get_tpu_info().vmem_capacity_bytes)
    except Exception:
        cap = 64 * 1024 * 1024  # be conservative (v7x-sized) if the query fails
    if vmem_limit_bytes is None:
        # 64 MiB on v5e/v6e, 32 MiB on v7x.
        vmem_limit_bytes = min(cap // 2, 64 * 1024 * 1024)
    if max_block_bytes is None:
        # 2 double-buffered input blocks use at most half the scoped limit.
        max_block_bytes = max(2 * 1024 * 1024, vmem_limit_bytes // 4)
    return max_block_bytes, vmem_limit_bytes


def adaptive_concat_pool2d(x, *, max_block_bytes=None, vmem_limit_bytes=None):
    """x: (B, C, H, W) -> (B, 2*C, 1, 1); channels [0, C) = max, [C, 2C) = mean."""
    B, C, H, W = x.shape
    HW = H * W
    x_flat = x.reshape(B, C, HW)  # free reshape; keeps NCHW memory layout
    itemsize = jnp.dtype(x.dtype).itemsize
    max_block_bytes, vmem_limit_bytes = _vmem_budget(max_block_bytes, vmem_limit_bytes)
    budget = max(1, max_block_bytes // itemsize)  # elements per input block
    sub = _sublane_unit(x.dtype)

    mask_tail = False
    if C * HW <= budget:
        # Whole (C, HW) slab fits: fold batch into the block so small CNN-head shapes
        # run in one (or a few) large DMA steps instead of many tiny ones.
        c_t, hw_t = C, HW
        b_t = _largest_batch_tile(B, budget // (C * HW))
    elif C * 128 <= budget and 1024 * C <= vmem_limit_bytes // 4:
        # Keep C whole (full sublane extent: legal for any C, no 128/8 constraint) and
        # split the HW lane axis; the second condition keeps the lane-padded
        # (1, C, 1) f32 accumulators a small fraction of the scoped VMEM limit.
        b_t, c_t = 1, C
        hw_cap = max(128, ((budget // C) // 128) * 128)
        hw_t, mask_tail = _pick_hw_tile(HW, hw_cap)
    else:
        # Pathological: C alone (or its scratch) nearly fills the budget.  Split channels
        # on the dtype sublane unit as well; the finalize store then uses a dynamic
        # lane-axis slice into the full-C output block.
        b_t = 1
        c_cap = max(sub, min(budget // 128, vmem_limit_bytes // 4096))
        # Fall back to full C (always a legal block extent) if C has no suitable divisor.
        c_t = _largest_divisor_tile(C, sub, c_cap) or C
        hw_cap = max(128, ((budget // c_t) // 128) * 128)
        hw_t, mask_tail = _pick_hw_tile(HW, hw_cap)

    n_b = B // b_t
    n_c = C // c_t
    n_hw = pl.cdiv(HW, hw_t)
    grid = (n_b, n_c, n_hw)

    # Accumulator scratch only when the HW axis is actually split.
    scratch_shapes = []
    if n_hw > 1:
        scratch_shapes = [
            pltpu.VMEM((b_t, c_t, 1), jnp.float32),  # running max
            pltpu.VMEM((b_t, c_t, 1), jnp.float32),  # running sum (f32 accumulation)
        ]

    kernel = functools.partial(
        _concat_pool_kernel,
        inv_hw=float(1.0 / HW),
        hw_total=HW,
        hw_t=hw_t,
        c_t=c_t,
        n_c_tiles=n_c,
        n_hw_tiles=n_hw,
        mask_tail=mask_tail,
    )

    out = pl.pallas_call(
        kernel,
        out_shape=jax.ShapeDtypeStruct((B, 2, C), x.dtype),
        grid_spec=pltpu.PrefetchScalarGridSpec(
            num_scalar_prefetch=0,
            grid=grid,
            in_specs=[pl.BlockSpec((b_t, c_t, hw_t), lambda b, c, k: (b, c, k))],
            # Full-channel, lane-dense output block; resident across the c / hw axes.
            out_specs=pl.BlockSpec((b_t, 2, C), lambda b, c, k: (b, 0, 0)),
            scratch_shapes=scratch_shapes,
        ),
        compiler_params=pltpu.CompilerParams(
            # Batch blocks are independent -> "parallel"; the c/hw axes revisit the same
            # output block -> "arbitrary".
            # TODO(synk): on v7x, shard the batch axis across both TensorCores with
            # pltpu.CORE_PARALLEL / pl.core_map once gated on the chip generation.
            dimension_semantics=("parallel", "arbitrary", "arbitrary"),
            vmem_limit_bytes=int(vmem_limit_bytes),
        ),
        cost_estimate=pl.CostEstimate(
            flops=2 * B * C * HW,
            transcendentals=0,
            bytes_accessed=int(B * C * HW * itemsize + B * 2 * C * itemsize),
        ),
    )(x_flat)

    # (B, 2, C) -> (B, 2*C, 1, 1): row-major reshape puts the C max channels first and
    # the C mean channels second, matching torch.cat([mp(x), ap(x)], 1).
    return out.reshape(B, 2 * C, 1, 1)


def _reference(x):
    ref_max = jnp.max(x, axis=(2, 3), keepdims=True)
    ref_avg = jnp.mean(x, axis=(2, 3), keepdims=True)
    return jnp.concatenate([ref_max, ref_avg], axis=1)


if __name__ == "__main__":
    key = jax.random.PRNGKey(0)
    k1, k2, k3, k4 = jax.random.split(key, 4)

    # 1) Small shape consistent with the module.
    x = jax.random.normal(k1, (2, 4, 16, 16), dtype=jnp.float32)
    y = adaptive_concat_pool2d(x)
    jax.block_until_ready(y)
    assert y.shape == (2, 8, 1, 1), y.shape
    assert jnp.allclose(y, _reference(x), atol=1e-5, rtol=1e-5)

    # 2) Typical CNN-head shape (non-128-multiple HW, batch folded into one block).
    x2 = jax.random.normal(k2, (2, 256, 14, 14), dtype=jnp.float32)
    y2 = adaptive_concat_pool2d(x2)
    jax.block_until_ready(y2)
    assert y2.shape == (2, 512, 1, 1), y2.shape
    assert jnp.allclose(y2, _reference(x2), atol=1e-5, rtol=1e-5)

    # 3) bf16 path (max exact in native dtype, mean accumulated in f32).
    x3 = jax.random.normal(k3, (2, 8, 16, 16), dtype=jnp.float32).astype(jnp.bfloat16)
    y3 = adaptive_concat_pool2d(x3)
    jax.block_until_ready(y3)
    assert jnp.allclose(y3.astype(jnp.float32),
                        _reference(x3.astype(jnp.float32)), atol=2e-2, rtol=2e-2)

    # 4) Force the HW-split + masked-tail accumulator path with a tiny block budget
    #    (HW = 2209 has no 128-multiple divisor -> in-kernel tail masking).
    x4 = jax.random.normal(k4, (1, 8, 47, 47), dtype=jnp.float32)
    y4 = adaptive_concat_pool2d(x4, max_block_bytes=64 * 1024)
    jax.block_until_ready(y4)
    assert y4.shape == (1, 16, 1, 1), y4.shape
    assert jnp.allclose(y4, _reference(x4), atol=1e-5, rtol=1e-5)

    print("KERNEL_OK")
</pallas_src>

<mosaic_0001>
module attributes {stable_mosaic.version = 11 : i64} {
  func.func @_concat_pool_kernel(%arg0: i32, %arg1: i32, %arg2: i32, %arg3: memref<2x4x256xf32, #tpu.memory_space<vmem>>, %arg4: memref<2x2x4xf32, #tpu.memory_space<vmem>>) attributes {dimension_semantics = [#tpu.dimension_semantics<parallel>, #tpu.dimension_semantics<arbitrary>, #tpu.dimension_semantics<arbitrary>], iteration_bounds = array<i64: 1, 1, 1>, scalar_prefetch = 0 : i64, scratch_operands = 0 : i64, tpu.core_type = #tpu.core_type<tc>, window_params = [{transform_indices = @transform_0, window_bounds = array<i64: 2, 4, 256>}, {transform_indices = @transform_1, window_bounds = array<i64: 2, 2, 4>}]} {
    %c0 = arith.constant 0 : index
    %c0_0 = arith.constant 0 : index
    %c0_1 = arith.constant 0 : index
    %0 = vector.load %arg3[%c0, %c0_0, %c0_1] : memref<2x4x256xf32, #tpu.memory_space<vmem>>, vector<2x4x256xf32>
    %cst = arith.constant dense<0xFF800000> : vector<2x4xf32>
    %1 = vector.multi_reduction <maximumf>, %0, %cst [2] : vector<2x4x256xf32> to vector<2x4xf32>
    %2 = vector.shape_cast %1 : vector<2x4xf32> to vector<2x4x1xf32>
    %cst_2 = arith.constant dense<0.000000e+00> : vector<2x4xf32>
    %3 = vector.multi_reduction <add>, %0, %cst_2 [2] : vector<2x4x256xf32> to vector<2x4xf32>
    %4 = vector.shape_cast %3 : vector<2x4xf32> to vector<2x4x1xf32>
    %5 = vector.shape_cast %2 : vector<2x4x1xf32> to vector<2x4xf32>
    %6 = vector.shape_cast %4 : vector<2x4x1xf32> to vector<2x4xf32>
    %cst_3 = arith.constant 3.906250e-03 : f32
    %7 = vector.broadcast %cst_3 : f32 to vector<2x4xf32>
    %8 = arith.mulf %6, %7 : vector<2x4xf32>
    %c0_4 = arith.constant 0 : index
    %c0_5 = arith.constant 0 : index
    %c0_6 = arith.constant 0 : index
    %9 = vector.load %arg4[%c0_4, %c0_5, %c0_6] : memref<2x2x4xf32, #tpu.memory_space<vmem>>, vector<2x1x4xf32>
    %10 = vector.shape_cast %9 : vector<2x1x4xf32> to vector<2x4xf32>
    %11 = vector.shape_cast %5 : vector<2x4xf32> to vector<2x1x4xf32>
    tpu.vector_store %arg4[%c0_4, %c0_5, %c0_6], %11 {strides = array<i32>} : memref<2x2x4xf32, #tpu.memory_space<vmem>>, vector<2x1x4xf32>,
    %c0_7 = arith.constant 0 : index
    %c1 = arith.constant 1 : index
    %c0_8 = arith.constant 0 : index
    %12 = vector.load %arg4[%c0_7, %c1, %c0_8] : memref<2x2x4xf32, #tpu.memory_space<vmem>>, vector<2x1x4xf32>
    %13 = vector.shape_cast %12 : vector<2x1x4xf32> to vector<2x4xf32>
    %14 = vector.shape_cast %8 : vector<2x4xf32> to vector<2x1x4xf32>
    tpu.vector_store %arg4[%c0_7, %c1, %c0_8], %14 {strides = array<i32>} : memref<2x2x4xf32, #tpu.memory_space<vmem>>, vector<2x1x4xf32>,
    return
  }
  func.func @transform_0(%arg0: i32, %arg1: i32, %arg2: i32) -> (i32, i32, i32) {
    %c0_i32 = arith.constant 0 : i32
    return %arg0, %arg1, %arg2 : i32, i32, i32
  }
  func.func @transform_1(%arg0: i32, %arg1: i32, %arg2: i32) -> (i32, i32, i32) {
    %c0_i32 = arith.constant 0 : i32
    %c0_i32_0 = arith.constant 0 : i32
    %c0_i32_1 = arith.constant 0 : i32
    return %arg0, %c0_i32, %c0_i32_0 : i32, i32, i32
  }
}

</mosaic_0001>

<bundles_post_ra>
// kernel: tpu_custom_call.1
= control target key start
LH: loop header
LB: loop body
LE: loop exit
PB: predicated region body
PF: predicated region fallthrough
CT: control target
= control target key end

     0   :  { %6 = vsyncpa [#allocation3], 0  ;;  %s202_s0 = inlined_call_operand.hbm [shape: f32[2,4,256], index: 0, kind: input, shape index: {}]   ;;  %s203_s1 = inlined_call_operand.hbm [shape: f32[2,2,4], index: 1, kind: output, shape index: {}]  }
   0x1   :  { %7 = vsyncpa [#allocation4], 0  ;;  %s158_s6 = smov [#allocation2]   ;;  %s110_s10 = scalar_lea.hbm %s202_s0, 256 }
   0x2   :  { %s13_s7 = sshll.u32 %s158_s6, 4  ;;  %p111_p0 = scmp.ne.s32.totalorder %s202_s0, %s110_s10  ;;  %s14_s7 = int_to_ptr.vmem [resolvable:$true] %s13_s7 }
   0x3   :  { %p114_p1 = scmp.lt.u32.totalorder %s110_s10, %s202_s0 }
   0x5   :  { %p116_p2 = pnand %p114_p1, %p111_p0 }
   0x7   :  { %119 = shalt.err (!%p116_p2)
}
   0x8   :  { %s120_s15 = scalar_lea.vmem %s14_s7, 256  ;;  %p125_p4 = scmp.lt.s32.totalorder %s14_s7, %s14_s7 }
   0x9   :  { %p121_p3 = scmp.ne.s32.totalorder %s14_s7, %s120_s15  ;;  %p126_p5 = scmp.lt.s32.totalorder %s120_s15, %s120_s15 }
   0xb   :  { %p127_p6 = por %p126_p5, %p125_p4 }
   0xd   :  { %p128_p7 = pnand %p127_p6, %p121_p3 }
   0xf   :  { %131 = shalt.err (!%p128_p7)
}
  0x10   :  { %s159_s16 = smov 128   ;;  %s160_s17 = smov 8  }
  0x11   :  { %19 = dma.hbm_to_vmem [thread:$0]  %s202_s0, 256, %s14_s7, [#allocation3], %s159_s16, %s159_s16, %s160_s17  }
  0x12   :  { %154 = dma.done.wait [#allocation3], 256  }
  0x13   :  { %155 = vsyncadd [#allocation3], 4294967040  ;;  %vm31_vm0 = vcmask 1043456   ;;  %v23_v0 = vld [vmem:[#allocation2] sm:$0xff]  ;;  %v24_v1 = vld [vmem:[#allocation2 + $0x8] sm:$0xff]  ;;  %v56_v16 = vlaneseq  ;;  %vm68_vm1 = vcmask 24576  }
  0x14   :  { %v27_v2 = vcombine.high %v23_v0, %v23_v0  ;;  %v42_v3 = vsel %vm31_vm0, %v23_v0, 0.0  ;;  %v32_v4 = vsel %vm31_vm0, %v23_v0, -inf  ;;  %v28_v5 = vcombine.high %v24_v1, %v24_v1  ;;  %s161_s0 = smov [#allocation5]  }
  0x15   :  { %v47_v6 = vsel %vm31_vm0, %v24_v1, 0.0  ;;  %v37_v7 = vsel %vm31_vm0, %v24_v1, -inf  ;;  %v57_v17 = vand.u32 127, %v56_v16  ;;  %v59_v18 = vshrl.u32 %v56_v16, 7  ;;  %s90_s20 = sshll.u32 %s161_s0, 4  ;;  %s91_s20 = int_to_ptr.vmem [resolvable:$true] %s90_s20 }
  0x16   :  { %v43_v8 = vsel %vm31_vm0, %v27_v2, 0.0  ;;  %v33_v9 = vsel %vm31_vm0, %v27_v2, -inf  ;;  %v48_v10 = vsel %vm31_vm0, %v28_v5, 0.0  ;;  %v38_v11 = vsel %vm31_vm0, %v28_v5, -inf  ;;  %s132_s21 = scalar_lea.vmem %s91_s20, 64  ;;  %p137_p9 = scmp.lt.s32.totalorder %s91_s20, %s91_s20 }
  0x17   :  { %v44_v12 = vadd.f32 %v43_v8, %v42_v3  ;;  %v34_v13 = vmax.f32 %v32_v4, %v33_v9  ;;  %v49_v14 = vadd.f32 %v48_v10, %v47_v6  ;;  %v39_v15 = vmax.f32 %v37_v7, %v38_v11  ;;  %p133_p8 = scmp.ne.s32.totalorder %s91_s20, %s132_s21  ;;  %p138_p10 = scmp.lt.s32.totalorder %s132_s21, %s132_s21 }
  0x18   :  { %v60_v19 = vsub.s32 %v57_v17, %v59_v18 }
  0x19   :  { %45 = vadd.xlane.f32.xlu0 %v44_v12  ;;  %35 = vmax.xlane.f32.xlu1 %v34_v13  ;;  %p139_p11 = por %p138_p10, %p137_p9 }
  0x1b   :  { %p140_p12 = pnand %p139_p11, %p133_p8 }
  0x1d   :  { %50 = vadd.xlane.f32.xlu0 %v49_v14  ;;  %40 = vmax.xlane.f32.xlu1 %v39_v15 }
  0xa6   :  { %v46_v20 = vpop.xlane.xlu0 %45  ;;  %v36_v21 = vpop.xlane.xlu1 %35 }
  0xa7   :  { %v52_v22 = vmul.f32 0.00390625, %v46_v20  ;;  %v61_v23 = vrot.slane %v36_v21, %v60_v19 }
  0xa9   :  { %v76_v24 = vrot.slane %v52_v22, %v60_v19  ;;  %69 = vst.msk [vmem:[#allocation5] sm:$0x1] %vm68_vm1, %v61_v23 }
  0xaa   :  { %v51_v25 = vpop.xlane.xlu0 %50  ;;  %v41_v26 = vpop.xlane.xlu1 %40 }
  0xab   :  { %83 = vst.msk [vmem:[#allocation5 + $0x1] sm:$0x1] %vm68_vm1, %v76_v24  ;;  %v53_v27 = vmul.f32 0.00390625, %v51_v25  ;;  %v65_v28 = vrot.slane %v41_v26, %v60_v19 }
  0xad   :  { %v80_v29 = vrot.slane %v53_v27, %v60_v19  ;;  %70 = vst.msk [vmem:[#allocation5 + $0x2] sm:$0x1] %vm68_vm1, %v65_v28 }
  0xaf   :  { %84 = vst.msk [vmem:[#allocation5 + $0x3] sm:$0x1] %vm68_vm1, %v80_v29 }
  0xb0   :  { %143 = shalt.err (!%p140_p12)
}
  0xb1   :  { %s144_s24 = scalar_lea.hbm %s203_s1, 64 }
  0xb2   :  { %p145_p13 = scmp.ne.s32.totalorder %s203_s1, %s144_s24  ;;  %p148_p0 = scmp.lt.u32.totalorder %s144_s24, %s203_s1 }
  0xb4   :  { %p150_p1 = pnand %p148_p0, %p145_p13 }
  0xb6   :  { %153 = shalt.err (!%p150_p1)
}
  0xb7   :  { %s162_s29 = smov 32   ;;  %s163_s30 = smov 2  }
  0xb8   :  { %96 = dma.vmem_to_hbm [thread:$0]  %s91_s20, 64, %s203_s1, [#allocation4], %s162_s29, %s162_s29, %s163_s30  }
  0xb9   :  { %156 = dma.done.wait [#allocation4], 64  }
  0xba   :  { %157 = vsyncadd [#allocation4], 4294967232 }
  0xbb   :  { %100 = vsyncpa [#allocation3], 1 }
  0xbc   :  { %101 = vsyncpa [#allocation4], 1 }

</bundles_post_ra>
